<compile_context>
chip_gen: v7x
topology: tpu7x:2x2x1
jax: 0.10.0
libtpu: 0.0.40
codegen_flags: <defaults>
</compile_context>

<pallas_src>
import functools

import jax
import jax.numpy as jnp
from jax.experimental import pallas as pl
from jax.experimental.pallas import tpu as pltpu


def fourier_feature_kernel(x_ref, a_ref, b_ref, o_ref, *, k, d):
    # x_ref:        (TB, d)       rows of x for this grid step
    # a_ref, b_ref: (k, 1, d*d)   frequency-major, lane-dense flattened params
    # o_ref:        (TB, d*d)     lane-dense flattened output block
    x = x_ref[...].astype(jnp.float32)                    # (TB, d), full 2-D block read

    # Hoist all trig and the lane-tiling out of the accumulate loop: trig runs
    # on the EUP slot, the tile is copy/XLU work, so both overlap with the VALU
    # multiply-adds below instead of stealing slots inside the loop.
    cos_t, sin_t = [], []
    for m in range(k):                                    # k is small & static -> unrolled
        xm = x * jnp.float32(m + 1)
        # Column p of the flattened (i, j) plane corresponds to j = p % d, so
        # tiling the (TB, d) trig block d times along the lane axis yields
        # exactly cos(x[n, j] * (m+1)) at every flattened position p = i*d + j.
        cos_t.append(jnp.tile(jnp.cos(xm), (1, d)))       # (TB, d*d)
        sin_t.append(jnp.tile(jnp.sin(xm), (1, d)))       # (TB, d*d)

    # Accumulate: a[m] / b[m] are (1, d*d) and broadcast over the TB rows.
    acc = a_ref[0] * cos_t[0] + b_ref[0] * sin_t[0]
    for m in range(1, k):
        acc = acc + a_ref[m] * cos_t[m] + b_ref[m] * sin_t[m]

    o_ref[...] = acc.astype(o_ref.dtype)                  # full-width unmasked store


def _pick_block_b(B):
    # Two parallel grid steps (v7x has 2 TCs) only if each half keeps the
    # sublane block a multiple of 8 (avoids masked sublane loads/stores);
    # otherwise take the whole batch in a single step (best on v5e/v6e and
    # at small B, where per-step overhead dominates).
    if B >= 16 and B % 16 == 0:
        return B // 2
    return B


def fourier_feature(x, a, b, *, block_b=None):
    """x: (B, d) float32; a, b: (d, d, k) float32 -> (B, d, d) float32."""
    B, d = x.shape
    k = a.shape[-1]
    dd = d * d

    # Glue: frequency-major + flatten the (i, j) plane row-major -> p = i*d + j.
    a_t = jnp.transpose(a, (2, 0, 1)).reshape(k, 1, dd)   # (k, 1, d*d)
    b_t = jnp.transpose(b, (2, 0, 1)).reshape(k, 1, dd)   # (k, 1, d*d)

    if block_b is None:
        block_b = _pick_block_b(B)
    assert B % block_b == 0, (B, block_b)
    grid_b = B // block_b

    kern = functools.partial(fourier_feature_kernel, k=k, d=d)
    out_flat = pl.pallas_call(
        kern,
        out_shape=jax.ShapeDtypeStruct((B, dd), x.dtype),
        grid_spec=pltpu.PrefetchScalarGridSpec(
            num_scalar_prefetch=0,
            grid=(grid_b,),
            in_specs=[
                pl.BlockSpec((block_b, d), lambda n: (n, 0)),     # x rows for step n
                pl.BlockSpec((k, 1, dd), lambda n: (0, 0, 0)),    # a (resident in VMEM)
                pl.BlockSpec((k, 1, dd), lambda n: (0, 0, 0)),    # b (resident in VMEM)
            ],
            out_specs=pl.BlockSpec((block_b, dd), lambda n: (n, 0)),
        ),
        compiler_params=pltpu.CompilerParams(
            dimension_semantics=("parallel",)),
    )(x, a_t, b_t)

    # Contiguous reshape back to (B, d, d) -- free in the wrapper.
    return out_flat.reshape(B, d, d)


def fourier_feature_ref(x, a, b):
    """Pure-JAX reference mirroring the PyTorch forward exactly."""
    k = a.shape[-1]
    freqs = jnp.arange(1, k + 1, dtype=x.dtype)
    cos_part = jnp.cos(x[..., None] * freqs)              # (B, d, k)
    sin_part = jnp.sin(x[..., None] * freqs)
    cos_part = cos_part[:, None, :, :] * a                # (B, d, d, k)
    sin_part = sin_part[:, None, :, :] * b
    return cos_part.sum(-1) + sin_part.sum(-1)             # (B, d, d)


if __name__ == "__main__":
    # Small, deterministic example consistent with the module:
    #   d = 32 features, k = 3 frequencies, batch = 8.  (num_heads unused in forward.)
    B, d, k = 8, 32, 3
    key = jax.random.PRNGKey(0)
    kx, ka, kb = jax.random.split(key, 3)
    x = jax.random.normal(kx, (B, d), dtype=jnp.float32)
    a = jax.random.normal(ka, (d, d, k), dtype=jnp.float32)   # nn.Parameter(torch.randn(d, d, k))
    b = jax.random.normal(kb, (d, d, k), dtype=jnp.float32)   # nn.Parameter(torch.randn(d, d, k))

    out = fourier_feature(x, a, b)
    out = jax.block_until_ready(out)

    ref = fourier_feature_ref(x, a, b)
    assert out.shape == (B, d, d), out.shape
    assert jnp.allclose(out, ref, atol=1e-5, rtol=1e-5), float(jnp.max(jnp.abs(out - ref)))

    print("KERNEL_OK")
</pallas_src>

<mosaic_0001>
module attributes {stable_mosaic.version = 11 : i64} {
  func.func @fourier_feature_kernel(%arg0: i32, %arg1: memref<8x32xf32, #tpu.memory_space<vmem>>, %arg2: memref<3x1x1024xf32, #tpu.memory_space<vmem>>, %arg3: memref<3x1x1024xf32, #tpu.memory_space<vmem>>, %arg4: memref<8x1024xf32, #tpu.memory_space<vmem>>) attributes {dimension_semantics = [#tpu.dimension_semantics<parallel>], iteration_bounds = array<i64: 1>, scalar_prefetch = 0 : i64, scratch_operands = 0 : i64, tpu.core_type = #tpu.core_type<tc>, window_params = [{transform_indices = @transform_0, window_bounds = array<i64: 8, 32>}, {pipeline_mode = #tpu.pipeline_mode<synchronous>, transform_indices = @transform_1, window_bounds = array<i64: 3, 1, 1024>}, {pipeline_mode = #tpu.pipeline_mode<synchronous>, transform_indices = @transform_2, window_bounds = array<i64: 3, 1, 1024>}, {transform_indices = @transform_3, window_bounds = array<i64: 8, 1024>}]} {
    %c0 = arith.constant 0 : index
    %c0_0 = arith.constant 0 : index
    %0 = vector.load %arg1[%c0, %c0_0] : memref<8x32xf32, #tpu.memory_space<vmem>>, vector<8x32xf32>
    %cst = arith.constant 1.000000e+00 : f32
    %1 = vector.broadcast %cst : f32 to vector<8x32xf32>
    %2 = arith.mulf %0, %1 : vector<8x32xf32>
    %3 = math.cos %2 : vector<8x32xf32>
    %4 = tpu.concatenate %3, %3, %3, %3, %3, %3, %3, %3, %3, %3, %3, %3, %3, %3, %3, %3, %3, %3, %3, %3, %3, %3, %3, %3, %3, %3, %3, %3, %3, %3, %3, %3 in 1 : vector<8x32xf32>, vector<8x32xf32>, vector<8x32xf32>, vector<8x32xf32>, vector<8x32xf32>, vector<8x32xf32>, vector<8x32xf32>, vector<8x32xf32>, vector<8x32xf32>, vector<8x32xf32>, vector<8x32xf32>, vector<8x32xf32>, vector<8x32xf32>, vector<8x32xf32>, vector<8x32xf32>, vector<8x32xf32>, vector<8x32xf32>, vector<8x32xf32>, vector<8x32xf32>, vector<8x32xf32>, vector<8x32xf32>, vector<8x32xf32>, vector<8x32xf32>, vector<8x32xf32>, vector<8x32xf32>, vector<8x32xf32>, vector<8x32xf32>, vector<8x32xf32>, vector<8x32xf32>, vector<8x32xf32>, vector<8x32xf32>, vector<8x32xf32> -> vector<8x1024xf32>
    %5 = math.sin %2 : vector<8x32xf32>
    %6 = tpu.concatenate %5, %5, %5, %5, %5, %5, %5, %5, %5, %5, %5, %5, %5, %5, %5, %5, %5, %5, %5, %5, %5, %5, %5, %5, %5, %5, %5, %5, %5, %5, %5, %5 in 1 : vector<8x32xf32>, vector<8x32xf32>, vector<8x32xf32>, vector<8x32xf32>, vector<8x32xf32>, vector<8x32xf32>, vector<8x32xf32>, vector<8x32xf32>, vector<8x32xf32>, vector<8x32xf32>, vector<8x32xf32>, vector<8x32xf32>, vector<8x32xf32>, vector<8x32xf32>, vector<8x32xf32>, vector<8x32xf32>, vector<8x32xf32>, vector<8x32xf32>, vector<8x32xf32>, vector<8x32xf32>, vector<8x32xf32>, vector<8x32xf32>, vector<8x32xf32>, vector<8x32xf32>, vector<8x32xf32>, vector<8x32xf32>, vector<8x32xf32>, vector<8x32xf32>, vector<8x32xf32>, vector<8x32xf32>, vector<8x32xf32>, vector<8x32xf32> -> vector<8x1024xf32>
    %cst_1 = arith.constant 2.000000e+00 : f32
    %7 = vector.broadcast %cst_1 : f32 to vector<8x32xf32>
    %8 = arith.mulf %0, %7 : vector<8x32xf32>
    %9 = math.cos %8 : vector<8x32xf32>
    %10 = tpu.concatenate %9, %9, %9, %9, %9, %9, %9, %9, %9, %9, %9, %9, %9, %9, %9, %9, %9, %9, %9, %9, %9, %9, %9, %9, %9, %9, %9, %9, %9, %9, %9, %9 in 1 : vector<8x32xf32>, vector<8x32xf32>, vector<8x32xf32>, vector<8x32xf32>, vector<8x32xf32>, vector<8x32xf32>, vector<8x32xf32>, vector<8x32xf32>, vector<8x32xf32>, vector<8x32xf32>, vector<8x32xf32>, vector<8x32xf32>, vector<8x32xf32>, vector<8x32xf32>, vector<8x32xf32>, vector<8x32xf32>, vector<8x32xf32>, vector<8x32xf32>, vector<8x32xf32>, vector<8x32xf32>, vector<8x32xf32>, vector<8x32xf32>, vector<8x32xf32>, vector<8x32xf32>, vector<8x32xf32>, vector<8x32xf32>, vector<8x32xf32>, vector<8x32xf32>, vector<8x32xf32>, vector<8x32xf32>, vector<8x32xf32>, vector<8x32xf32> -> vector<8x1024xf32>
    %11 = math.sin %8 : vector<8x32xf32>
    %12 = tpu.concatenate %11, %11, %11, %11, %11, %11, %11, %11, %11, %11, %11, %11, %11, %11, %11, %11, %11, %11, %11, %11, %11, %11, %11, %11, %11, %11, %11, %11, %11, %11, %11, %11 in 1 : vector<8x32xf32>, vector<8x32xf32>, vector<8x32xf32>, vector<8x32xf32>, vector<8x32xf32>, vector<8x32xf32>, vector<8x32xf32>, vector<8x32xf32>, vector<8x32xf32>, vector<8x32xf32>, vector<8x32xf32>, vector<8x32xf32>, vector<8x32xf32>, vector<8x32xf32>, vector<8x32xf32>, vector<8x32xf32>, vector<8x32xf32>, vector<8x32xf32>, vector<8x32xf32>, vector<8x32xf32>, vector<8x32xf32>, vector<8x32xf32>, vector<8x32xf32>, vector<8x32xf32>, vector<8x32xf32>, vector<8x32xf32>, vector<8x32xf32>, vector<8x32xf32>, vector<8x32xf32>, vector<8x32xf32>, vector<8x32xf32>, vector<8x32xf32> -> vector<8x1024xf32>
    %cst_2 = arith.constant 3.000000e+00 : f32
    %13 = vector.broadcast %cst_2 : f32 to vector<8x32xf32>
    %14 = arith.mulf %0, %13 : vector<8x32xf32>
    %15 = math.cos %14 : vector<8x32xf32>
    %16 = tpu.concatenate %15, %15, %15, %15, %15, %15, %15, %15, %15, %15, %15, %15, %15, %15, %15, %15, %15, %15, %15, %15, %15, %15, %15, %15, %15, %15, %15, %15, %15, %15, %15, %15 in 1 : vector<8x32xf32>, vector<8x32xf32>, vector<8x32xf32>, vector<8x32xf32>, vector<8x32xf32>, vector<8x32xf32>, vector<8x32xf32>, vector<8x32xf32>, vector<8x32xf32>, vector<8x32xf32>, vector<8x32xf32>, vector<8x32xf32>, vector<8x32xf32>, vector<8x32xf32>, vector<8x32xf32>, vector<8x32xf32>, vector<8x32xf32>, vector<8x32xf32>, vector<8x32xf32>, vector<8x32xf32>, vector<8x32xf32>, vector<8x32xf32>, vector<8x32xf32>, vector<8x32xf32>, vector<8x32xf32>, vector<8x32xf32>, vector<8x32xf32>, vector<8x32xf32>, vector<8x32xf32>, vector<8x32xf32>, vector<8x32xf32>, vector<8x32xf32> -> vector<8x1024xf32>
    %17 = math.sin %14 : vector<8x32xf32>
    %18 = tpu.concatenate %17, %17, %17, %17, %17, %17, %17, %17, %17, %17, %17, %17, %17, %17, %17, %17, %17, %17, %17, %17, %17, %17, %17, %17, %17, %17, %17, %17, %17, %17, %17, %17 in 1 : vector<8x32xf32>, vector<8x32xf32>, vector<8x32xf32>, vector<8x32xf32>, vector<8x32xf32>, vector<8x32xf32>, vector<8x32xf32>, vector<8x32xf32>, vector<8x32xf32>, vector<8x32xf32>, vector<8x32xf32>, vector<8x32xf32>, vector<8x32xf32>, vector<8x32xf32>, vector<8x32xf32>, vector<8x32xf32>, vector<8x32xf32>, vector<8x32xf32>, vector<8x32xf32>, vector<8x32xf32>, vector<8x32xf32>, vector<8x32xf32>, vector<8x32xf32>, vector<8x32xf32>, vector<8x32xf32>, vector<8x32xf32>, vector<8x32xf32>, vector<8x32xf32>, vector<8x32xf32>, vector<8x32xf32>, vector<8x32xf32>, vector<8x32xf32> -> vector<8x1024xf32>
    %c0_3 = arith.constant 0 : index
    %c0_4 = arith.constant 0 : index
    %c0_5 = arith.constant 0 : index
    %19 = vector.load %arg2[%c0_3, %c0_4, %c0_5] : memref<3x1x1024xf32, #tpu.memory_space<vmem>>, vector<1x1x1024xf32>
    %20 = vector.shape_cast %19 : vector<1x1x1024xf32> to vector<1x1024xf32>
    %21 = vector.broadcast %20 : vector<1x1024xf32> to vector<8x1024xf32>
    %22 = arith.mulf %21, %4 : vector<8x1024xf32>
    %c0_6 = arith.constant 0 : index
    %c0_7 = arith.constant 0 : index
    %c0_8 = arith.constant 0 : index
    %23 = vector.load %arg3[%c0_6, %c0_7, %c0_8] : memref<3x1x1024xf32, #tpu.memory_space<vmem>>, vector<1x1x1024xf32>
    %24 = vector.shape_cast %23 : vector<1x1x1024xf32> to vector<1x1024xf32>
    %25 = vector.broadcast %24 : vector<1x1024xf32> to vector<8x1024xf32>
    %26 = arith.mulf %25, %6 : vector<8x1024xf32>
    %27 = arith.addf %22, %26 : vector<8x1024xf32>
    %c1 = arith.constant 1 : index
    %c0_9 = arith.constant 0 : index
    %c0_10 = arith.constant 0 : index
    %28 = vector.load %arg2[%c1, %c0_9, %c0_10] : memref<3x1x1024xf32, #tpu.memory_space<vmem>>, vector<1x1x1024xf32>
    %29 = vector.shape_cast %28 : vector<1x1x1024xf32> to vector<1x1024xf32>
    %30 = vector.broadcast %29 : vector<1x1024xf32> to vector<8x1024xf32>
    %31 = arith.mulf %30, %10 : vector<8x1024xf32>
    %32 = arith.addf %27, %31 : vector<8x1024xf32>
    %c1_11 = arith.constant 1 : index
    %c0_12 = arith.constant 0 : index
    %c0_13 = arith.constant 0 : index
    %33 = vector.load %arg3[%c1_11, %c0_12, %c0_13] : memref<3x1x1024xf32, #tpu.memory_space<vmem>>, vector<1x1x1024xf32>
    %34 = vector.shape_cast %33 : vector<1x1x1024xf32> to vector<1x1024xf32>
    %35 = vector.broadcast %34 : vector<1x1024xf32> to vector<8x1024xf32>
    %36 = arith.mulf %35, %12 : vector<8x1024xf32>
    %37 = arith.addf %32, %36 : vector<8x1024xf32>
    %c2 = arith.constant 2 : index
    %c0_14 = arith.constant 0 : index
    %c0_15 = arith.constant 0 : index
    %38 = vector.load %arg2[%c2, %c0_14, %c0_15] : memref<3x1x1024xf32, #tpu.memory_space<vmem>>, vector<1x1x1024xf32>
    %39 = vector.shape_cast %38 : vector<1x1x1024xf32> to vector<1x1024xf32>
    %40 = vector.broadcast %39 : vector<1x1024xf32> to vector<8x1024xf32>
    %41 = arith.mulf %40, %16 : vector<8x1024xf32>
    %42 = arith.addf %37, %41 : vector<8x1024xf32>
    %c2_16 = arith.constant 2 : index
    %c0_17 = arith.constant 0 : index
    %c0_18 = arith.constant 0 : index
    %43 = vector.load %arg3[%c2_16, %c0_17, %c0_18] : memref<3x1x1024xf32, #tpu.memory_space<vmem>>, vector<1x1x1024xf32>
    %44 = vector.shape_cast %43 : vector<1x1x1024xf32> to vector<1x1024xf32>
    %45 = vector.broadcast %44 : vector<1x1024xf32> to vector<8x1024xf32>
    %46 = arith.mulf %45, %18 : vector<8x1024xf32>
    %47 = arith.addf %42, %46 : vector<8x1024xf32>
    %c0_19 = arith.constant 0 : index
    %c0_20 = arith.constant 0 : index
    %48 = vector.load %arg4[%c0_19, %c0_20] : memref<8x1024xf32, #tpu.memory_space<vmem>>, vector<8x1024xf32>
    tpu.vector_store %arg4[%c0_19, %c0_20], %47 {strides = array<i32>} : memref<8x1024xf32, #tpu.memory_space<vmem>>, vector<8x1024xf32>,
    return
  }
  func.func @transform_0(%arg0: i32) -> (i32, i32) {
    %c0_i32 = arith.constant 0 : i32
    %c0_i32_0 = arith.constant 0 : i32
    return %arg0, %c0_i32 : i32, i32
  }
  func.func @transform_1(%arg0: i32) -> (i32, i32, i32) {
    %c0_i32 = arith.constant 0 : i32
    %c0_i32_0 = arith.constant 0 : i32
    %c0_i32_1 = arith.constant 0 : i32
    %c0_i32_2 = arith.constant 0 : i32
    return %c0_i32, %c0_i32_0, %c0_i32_1 : i32, i32, i32
  }
  func.func @transform_2(%arg0: i32) -> (i32, i32, i32) {
    %c0_i32 = arith.constant 0 : i32
    %c0_i32_0 = arith.constant 0 : i32
    %c0_i32_1 = arith.constant 0 : i32
    %c0_i32_2 = arith.constant 0 : i32
    return %c0_i32, %c0_i32_0, %c0_i32_1 : i32, i32, i32
  }
  func.func @transform_3(%arg0: i32) -> (i32, i32) {
    %c0_i32 = arith.constant 0 : i32
    %c0_i32_0 = arith.constant 0 : i32
    return %arg0, %c0_i32 : i32, i32
  }
}

</mosaic_0001>

<bundles_post_ra>
// kernel: tpu_custom_call.1
= control target key start
LH: loop header
LB: loop body
LE: loop exit
PB: predicated region body
PF: predicated region fallthrough
CT: control target
= control target key end

     0   :  { %8 = vsyncpa [#allocation3], 0  ;;  %s1880_s0 = inlined_call_operand.hbm [shape: f32[8,32], index: 0, kind: input, shape index: {}]   ;;  %s1881_s1 = inlined_call_operand.hbm [shape: f32[3,1,1024], index: 1, kind: input, shape index: {}]   ;;  %s1882_s2 = inlined_call_operand.hbm [shape: f32[3,1,1024], index: 2, kind: input, shape index: {}]   ;;  %s1883_s3 = inlined_call_operand.hbm [shape: f32[8,1024], index: 3, kind: output, shape index: {}]  }
   0x1   :  { %9 = vsyncpa [#allocation6], 0 }
   0x2   :  { %10 = vsyncpa [#allocation4], 0  ;;  %s1284_s12 = smov [#allocation5]   ;;  %s1190_s16 = scalar_lea.hbm %s1881_s1, 384 }
   0x3   :  { %s26_s13 = sshll.u32 %s1284_s12, 4  ;;  %p1191_p0 = scmp.ne.s32.totalorder %s1881_s1, %s1190_s16  ;;  %s27_s13 = int_to_ptr.vmem [resolvable:$true] %s26_s13 }
   0x4   :  { %p1194_p1 = scmp.lt.u32.totalorder %s1190_s16, %s1881_s1 }
   0x6   :  { %p1196_p2 = pnand %p1194_p1, %p1191_p0 }
   0x8   :  { %1199 = shalt.err (!%p1196_p2)
}
   0x9   :  { %s1200_s21 = scalar_lea.vmem %s27_s13, 384  ;;  %p1205_p4 = scmp.lt.s32.totalorder %s27_s13, %s27_s13 }
   0xa   :  { %p1201_p3 = scmp.ne.s32.totalorder %s27_s13, %s1200_s21  ;;  %p1206_p5 = scmp.lt.s32.totalorder %s1200_s21, %s1200_s21 }
   0xc   :  { %p1207_p6 = por %p1206_p5, %p1205_p4 }
   0xe   :  { %p1208_p7 = pnand %p1207_p6, %p1201_p3 }
  0x10   :  { %1211 = shalt.err (!%p1208_p7)
}
  0x11   :  { %s1285_s22 = smov 128   ;;  %s1286_s23 = smov 8  }
  0x12   :  { %32 = dma.hbm_to_vmem [thread:$0]  %s1881_s1, 384, %s27_s13, [#allocation6], %s1285_s22, %s1285_s22, %s1286_s23  }
  0x13   :  { %s1287_s26 = smov [#allocation2]   ;;  %s1288_s28 = smov [#allocation7]  }
  0x14   :  { %s17_s27 = sshll.u32 %s1287_s26, 4  ;;  %s38_s29 = sshll.u32 %s1288_s28, 4  ;;  %s18_s27 = int_to_ptr.vmem [resolvable:$true] %s17_s27  ;;  %s39_s29 = int_to_ptr.vmem [resolvable:$true] %s38_s29 }
  0x15   :  { %s1212_s5 = scalar_lea.hbm %s1880_s0, 128 }
  0x16   :  { %p1213_p8 = scmp.ne.s32.totalorder %s1880_s0, %s1212_s5  ;;  %p1216_p9 = scmp.lt.u32.totalorder %s1212_s5, %s1880_s0 }
  0x18   :  { %p1218_p10 = pnand %p1216_p9, %p1213_p8 }
  0x1a   :  { %1221 = shalt.err (!%p1218_p10)
}
  0x1b   :  { %s1222_s1 = scalar_lea.vmem %s18_s27, 128  ;;  %p1227_p12 = scmp.lt.s32.totalorder %s18_s27, %s18_s27 }
  0x1c   :  { %p1223_p11 = scmp.ne.s32.totalorder %s18_s27, %s1222_s1  ;;  %p1228_p13 = scmp.lt.s32.totalorder %s1222_s1, %s1222_s1 }
  0x1e   :  { %p1229_p0 = por %p1228_p13, %p1227_p12 }
  0x20   :  { %p1230_p1 = pnand %p1229_p0, %p1223_p11 }
  0x22   :  { %1233 = shalt.err (!%p1230_p1)
}
  0x23   :  { %20 = dma.hbm_to_vmem [thread:$0]  %s1880_s0, 128, %s18_s27, [#allocation3]  }
  0x24   :  { %s1234_s14 = scalar_lea.hbm %s1882_s2, 384 }
  0x25   :  { %p1235_p2 = scmp.ne.s32.totalorder %s1882_s2, %s1234_s14  ;;  %p1238_p3 = scmp.lt.u32.totalorder %s1234_s14, %s1882_s2 }
  0x27   :  { %p1240_p4 = pnand %p1238_p3, %p1235_p2 }
  0x29   :  { %1243 = shalt.err (!%p1240_p4)
}
  0x2a   :  { %s1244_s19 = scalar_lea.vmem %s39_s29, 384  ;;  %p1249_p6 = scmp.lt.s32.totalorder %s39_s29, %s39_s29 }
  0x2b   :  { %p1245_p5 = scmp.ne.s32.totalorder %s39_s29, %s1244_s19  ;;  %p1250_p7 = scmp.lt.s32.totalorder %s1244_s19, %s1244_s19 }
  0x2d   :  { %p1251_p8 = por %p1250_p7, %p1249_p6 }
  0x2f   :  { %p1252_p9 = pnand %p1251_p8, %p1245_p5 }
  0x31   :  { %1255 = shalt.err (!%p1252_p9)
}
  0x32   :  { %44 = dma.hbm_to_vmem [thread:$0]  %s1882_s2, 384, %s39_s29, [#allocation6], %s1285_s22, %s1285_s22, %s1286_s23  }
  0x33   :  { %1278 = dma.done.wait [#allocation3], 128  }
  0x34   :  { %1279 = vsyncadd [#allocation3], 4294967168 }
  0x35   :  { %1280 = dma.done.wait [#allocation6], 768  }
  0x36   :  { %1281 = vsyncadd [#allocation6], 4294966528  ;;  %v1361_v0 = vld [vmem:[#allocation2] sm:$0xff]  ;;  %v1289_v26 = vmov 683565275   ;;  %s1295_s2 = smov 64  }
  0x37   :  { %v55_v1 = vand.u32 2147483647, %v1361_v0  ;;  %v58_v2 = vand.u32 2139095040, %v1361_v0  ;;  %v1366_v3 = vmul.f32 2.0, %v1361_v0  ;;  %v1369_v4 = vmul.f32 3.0, %v1361_v0  ;;  %s1296_s21 = smov 32  }
  0x38   :  { %v1290_v28 = vmov 2475754826   ;;  %v1291_v30 = vmov 2131351028   ;;  %v1292_v32 = vmov 2102212464  }
  0x39   :  { %v59_v5 = vshrl.u32 %v58_v2, 23  ;;  %v62_v6 = vand.u32 8388607, %v55_v1  ;;  %v292_v7 = vand.u32 2147483647, %v1366_v3  ;;  %v295_v8 = vand.u32 2139095040, %v1366_v3 }
  0x3a   :  { %v529_v12 = vand.u32 2139095040, %v1369_v4  ;;  %v1293_v34 = vmov 920167782   ;;  %v1294_v41 = vmov 1326507024   ;;  %s1297_s22 = smov 96  }
  0x3b   :  { %v1127_v9 = vadd.s32 4294967169, %v59_v5  ;;  %v296_v10 = vshrl.u32 %v295_v8, 23  ;;  %v299_v11 = vand.u32 8388607, %v292_v7  ;;  %v63_v14 = vor.u32 8388608, %v62_v6  ;;  %s1298_s23 = smov [#allocation8]  }
  0x3c   :  { %v530_v17 = vshrl.u32 %v529_v12, 23  ;;  %s1117_s24 = sshll.u32 %s1298_s23, 4  ;;  %s1118_s24 = int_to_ptr.vmem [resolvable:$true] %s1117_s24 }
  0x3d   :  { %v65_v13 = vadd.s32 1, %v1127_v9  ;;  %v1135_v15 = vadd.s32 4294967169, %v296_v10  ;;  %v300_v16 = vor.u32 8388608, %v299_v11  ;;  %v1378_v22 = vshll.u32 %v63_v14, 8  ;;  %s1256_s25 = scalar_lea.vmem %s1118_s24, 1024  ;;  %p1261_p11 = scmp.lt.s32.totalorder %s1118_s24, %s1118_s24 }
  0x3e   :  { %v1382_v24 = vadd.s32 4294967169, %v530_v17  ;;  %p1257_p10 = scmp.ne.s32.totalorder %s1118_s24, %s1256_s25  ;;  %p1262_p12 = scmp.lt.s32.totalorder %s1256_s25, %s1256_s25 }
  0x3f   :  { %vm66_vm0 = vcmp.gt.s32.totalorder %v65_v13, 0  ;;  %v302_v19 = vadd.s32 1, %v1135_v15  ;;  %v1380_v23 = vshll.u32 %v300_v16, 8 }
  0x40   :  { %v67_v18 = vsel %vm66_vm0, %v65_v13, 0  ;;  %p1263_p13 = por %p1262_p12, %p1261_p11 }
  0x41   :  { %v68_v20 = vshrl.u32 %v67_v18, 5  ;;  %v69_v21 = vand.u32 31, %v67_v18  ;;  %vm303_vm1 = vcmp.gt.s32.totalorder %v302_v19, 0 }
  0x42   :  { %v304_v46 = vsel %vm303_vm1, %v302_v19, 0  ;;  %p1264_p0 = pnand %p1263_p13, %p1257_p10 }
  0x43   :  { %v70_v25 = vsub.s32 32, %v69_v21  ;;  %v72_v27 = vshll.u32 %v1289_v26, %v69_v21  ;;  %v75_v29 = vshll.u32 %v1290_v28, %v69_v21  ;;  %v78_v31 = vshll.u32 %v1291_v30, %v69_v21 }
  0x44   :  { %v81_v33 = vshll.u32 %v1292_v32, %v69_v21  ;;  %v84_v35 = vshll.u32 %v1293_v34, %v69_v21  ;;  %vm87_vm2 = vcmp.lt.s32.totalorder %v68_v20, 1  ;;  %vm88_vm3 = vcmp.lt.s32.totalorder %v68_v20, 2 }
  0x45   :  { %v71_v36 = vshrl.u32 %v1289_v26, %v70_v25  ;;  %v73_v37 = vshrl.u32 %v1290_v28, %v70_v25  ;;  %v76_v38 = vshrl.u32 %v1291_v30, %v70_v25  ;;  %v79_v39 = vshrl.u32 %v1292_v32, %v70_v25 }
  0x46   :  { %v82_v40 = vshrl.u32 %v1293_v34, %v70_v25  ;;  %v85_v42 = vshrl.u32 %v1294_v41, %v70_v25  ;;  %vm89_vm4 = vcmp.lt.s32.totalorder %v68_v20, 3  ;;  %vm90_vm5 = vcmp.lt.s32.totalorder %v68_v20, 4 }
  0x47   :  { %v74_v43 = vor.u32 %v73_v37, %v72_v27  ;;  %v77_v44 = vor.u32 %v76_v38, %v75_v29  ;;  %v80_v45 = vor.u32 %v79_v39, %v78_v31  ;;  %v305_v49 = vshrl.u32 %v304_v46, 5 }
  0x48   :  { %v83_v47 = vor.u32 %v82_v40, %v81_v33  ;;  %v86_v48 = vor.u32 %v85_v42, %v84_v35  ;;  %v306_v50 = vand.u32 31, %v304_v46  ;;  %v536_v29 = vadd.s32 1, %v1382_v24 }
  0x49   :  { %v91_v51 = vsel %vm87_vm2, %v71_v36, %v74_v43  ;;  %v92_v52 = vsel %vm90_vm5, %v80_v45, 2102212464  ;;  %v95_v53 = vsel %vm87_vm2, %v74_v43, %v77_v44  ;;  %v99_v54 = vsel %vm87_vm2, %v77_v44, %v80_v45 }
  0x4a   :  { %v93_v55 = vsel %vm89_vm4, %v77_v44, %v92_v52  ;;  %v96_v56 = vsel %vm90_vm5, %v83_v47, 920167782  ;;  %v100_v57 = vsel %vm90_vm5, %v86_v48, 1326507024  ;;  %v307_v58 = vsub.s32 32, %v306_v50 }
  0x4b   :  { %v94_v59 = vsel %vm88_vm3, %v91_v51, %v93_v55  ;;  %v97_v60 = vsel %vm89_vm4, %v80_v45, %v96_v56  ;;  %v101_v61 = vsel %vm89_vm4, %v83_v47, %v100_v57  ;;  %v309_v62 = vshll.u32 %v1289_v26, %v306_v50 }
  0x4c   :  { %v98_v63 = vsel %vm88_vm3, %v95_v53, %v97_v60  ;;  %v102_v2 = vsel %vm88_vm3, %v99_v54, %v101_v61  ;;  %v110_v5 = vmul.u32 %v1378_v22, %v94_v59  ;;  %v308_v6 = vshrl.u32 %v1289_v26, %v307_v58 }
  0x4d   :  { %v1409_v8 = vmul.u32.u64.low %v1378_v22, %v102_v2  ;;  %v1410_v9 = vmul.u32.u64.high %v1378_v22, %v102_v2, %v1409_v8  ;;  %v1413_v10 = vmul.u32.u64.low %v1378_v22, %v98_v63  ;;  %v1414_v11 = vmul.u32.u64.high %v1378_v22, %v98_v63, %v1413_v10 }
  0x4e   :  { %v310_v12 = vshrl.u32 %v1290_v28, %v307_v58  ;;  %v312_v13 = vshll.u32 %v1290_v28, %v306_v50  ;;  %v313_v14 = vshrl.u32 %v1291_v30, %v307_v58  ;;  %v315_v15 = vshll.u32 %v1291_v30, %v306_v50 }
  0x4f   :  { %v316_v16 = vshrl.u32 %v1292_v32, %v307_v58  ;;  %v318_v17 = vshll.u32 %v1292_v32, %v306_v50  ;;  %v319_v18 = vshrl.u32 %v1293_v34, %v307_v58  ;;  %v321_v19 = vshll.u32 %v1293_v34, %v306_v50 }
  0x50   :  { %v311_v20 = vor.u32 %v310_v12, %v309_v62  ;;  %v314_v21 = vor.u32 %v313_v14, %v312_v13  ;;  %v322_v22 = vshrl.u32 %v1294_v41, %v307_v58  ;;  %vm324_vm6 = vcmp.lt.s32.totalorder %v305_v49, 1 }
  0x51   :  { %vm112_vm7 = vc.u32 %v1410_v9, %v1413_v10  ;;  %v113_v25 = vadd.s32 1, %v1414_v11  ;;  %v317_v27 = vor.u32 %v316_v16, %v315_v15  ;;  %v320_v31 = vor.u32 %v319_v18, %v318_v17 }
  0x52   :  { %v323_v33 = vor.u32 %v322_v22, %v321_v19  ;;  %vm325_vm8 = vcmp.lt.s32.totalorder %v305_v49, 2  ;;  %vm326_vm9 = vcmp.lt.s32.totalorder %v305_v49, 3  ;;  %vm327_vm10 = vcmp.lt.s32.totalorder %v305_v49, 4 }
  0x53   :  { %v114_v35 = vsel %vm112_vm7, %v113_v25, %v1414_v11  ;;  %v328_v36 = vsel %vm324_vm6, %v308_v6, %v311_v20  ;;  %v332_v37 = vsel %vm324_vm6, %v311_v20, %v314_v21  ;;  %v329_v39 = vsel %vm327_vm10, %v317_v27, 2102212464 }
  0x54   :  { %v115_v38 = vadd.s32 %v114_v35, %v110_v5  ;;  %v333_v40 = vsel %vm327_vm10, %v320_v31, 920167782  ;;  %v336_v42 = vsel %vm324_vm6, %v314_v21, %v317_v27  ;;  %v330_v43 = vsel %vm326_vm9, %v314_v21, %v329_v39 }
  0x55   :  { %v334_v44 = vsel %vm326_vm9, %v317_v27, %v333_v40  ;;  %v337_v45 = vsel %vm327_vm10, %v323_v33, 1326507024  ;;  %vm537_vm11 = vcmp.gt.s32.totalorder %v536_v29, 0  ;;  %v331_v48 = vsel %vm325_vm8, %v328_v36, %v330_v43 }
  0x56   :  { %v116_v24 = vadd.s32 536870912, %v115_v38  ;;  %v335_v46 = vsel %vm325_vm8, %v332_v37, %v334_v44  ;;  %v338_v47 = vsel %vm326_vm9, %v320_v31, %v337_v45  ;;  %v538_v56 = vsel %vm537_vm11, %v536_v29, 0 }
  0x57   :  { %v339_v50 = vsel %vm325_vm8, %v336_v42, %v338_v47  ;;  %v1438_v51 = vmul.u32.u64.low %v1380_v23, %v335_v46  ;;  %v1439_v52 = vmul.u32.u64.high %v1380_v23, %v335_v46, %v1438_v51  ;;  %v540_v57 = vand.u32 31, %v538_v56 }
  0x58   :  { %v1442_v53 = vshrl.u32 %v116_v24, 30  ;;  %v1445_v54 = vmul.u32.u64.low %v1380_v23, %v339_v50  ;;  %v1446_v55 = vmul.u32.u64.high %v1380_v23, %v339_v50, %v1445_v54  ;;  %v347_v59 = vmul.u32 %v1380_v23, %v331_v48 }
  0x59   :  { %v350_v49 = vadd.s32 1, %v1439_v52  ;;  %v526_v61 = vand.u32 2147483647, %v1369_v4  ;;  %v541_v63 = vsub.s32 32, %v540_v57  ;;  %v543_v23 = vshll.u32 %v1289_v26, %v540_v57 }
  0x5a   :  { %v118_v58 = vshll.u32 %v1442_v53, 30  ;;  %vm349_vm12 = vc.u32 %v1446_v55, %v1438_v51  ;;  %v546_v13 = vshll.u32 %v1290_v28, %v540_v57  ;;  %v549_v16 = vshll.u32 %v1291_v30, %v540_v57 }
  0x5b   :  { %v351_v62 = vsel %vm349_vm12, %v350_v49, %v1439_v52  ;;  %v533_v8 = vand.u32 8388607, %v526_v61  ;;  %v544_v12 = vshrl.u32 %v1290_v28, %v541_v63  ;;  %v547_v15 = vshrl.u32 %v1291_v30, %v541_v63 }
  0x5c   :  { %v119_v60 = vsub.s32 %v115_v38, %v118_v58  ;;  %v352_v5 = vadd.s32 %v351_v62, %v347_v59  ;;  %v550_v17 = vshrl.u32 %v1292_v32, %v541_v63  ;;  %v539_v19 = vshrl.u32 %v538_v56, 5 }
  0x5d   :  { %v552_v20 = vshll.u32 %v1292_v32, %v540_v57  ;;  %v553_v21 = vshrl.u32 %v1293_v34, %v541_v63  ;;  %v111_v22 = vadd.s32 %v1413_v10, %v1410_v9  ;;  %v534_v27 = vor.u32 8388608, %v533_v8 }
  0x5e   :  { %v121_v2 = vsub.s32 0, %v119_v60  ;;  %v353_v11 = vadd.s32 536870912, %v352_v5  ;;  %v542_v29 = vshrl.u32 %v1289_v26, %v541_v63  ;;  %v555_v30 = vshll.u32 %v1293_v34, %v540_v57 }
  0x5f   :  { %v556_v31 = vshrl.u32 %v1294_v41, %v541_v63  ;;  %v545_v33 = vor.u32 %v544_v12, %v543_v23  ;;  %v548_v35 = vor.u32 %v547_v15, %v546_v13  ;;  %v551_v36 = vor.u32 %v550_v17, %v549_v16 }
  0x60   :  { %v1128_v6 = vmin.u32 %v121_v2, %v119_v60  ;;  %v1463_v18 = vshrl.u32 %v353_v11, 30  ;;  %v554_v38 = vor.u32 %v553_v21, %v552_v20  ;;  %vm561_vm14 = vcmp.lt.s32.totalorder %v539_v19, 4 }
  0x61   :  { %v563_v40 = vsel %vm561_vm14, %v551_v36, 2102212464  ;;  %v557_v43 = vor.u32 %v556_v31, %v555_v30  ;;  %vm558_vm15 = vcmp.lt.s32.totalorder %v539_v19, 1  ;;  %vm560_vm0 = vcmp.lt.s32.totalorder %v539_v19, 3 }
  0x62   :  { %v123_v14 = vclz %v1128_v6  ;;  %v355_v28 = vshll.u32 %v1463_v18, 30  ;;  %v574_v41 = vshll.u32 %v534_v27, 8  ;;  %vm559_vm1 = vcmp.lt.s32.totalorder %v539_v19, 2 }
  0x63   :  { %v562_v45 = vsel %vm558_vm15, %v542_v29, %v545_v33  ;;  %v564_v24 = vsel %vm560_vm0, %v548_v35, %v563_v40  ;;  %v566_v48 = vsel %vm558_vm15, %v545_v33, %v548_v35  ;;  %v567_v50 = vsel %vm561_vm14, %v554_v38, 920167782 }
  0x64   :  { %v1129_v25 = vadd.s32 4294967294, %v123_v14  ;;  %v356_v37 = vsub.s32 %v352_v5, %v355_v28  ;;  %v568_v54 = vsel %vm560_vm0, %v551_v36, %v567_v50  ;;  %v570_v56 = vsel %vm558_vm15, %v548_v35, %v551_v36 }
  0x65   :  { %v571_v57 = vsel %vm561_vm14, %v557_v43, 1326507024  ;;  %v141_v49 = vsub.s32 4, %v1442_v53  ;;  %v565_v62 = vsel %vm559_vm1, %v562_v45, %v564_v24  ;;  %v569_v63 = vsel %vm559_vm1, %v566_v48, %v568_v54 }
  0x66   :  { %vm1130_vm13 = vcmp.lt.s32.totalorder %v1129_v25, 0  ;;  %v358_v42 = vsub.s32 0, %v356_v37  ;;  %v572_v2 = vsel %vm560_vm0, %v554_v38, %v571_v57  ;;  %v348_v23 = vadd.s32 %v1438_v51, %v1446_v55 }
  0x67   :  { %v126_v32 = vsel %vm1130_vm13, 0, %v1129_v25  ;;  %v573_v6 = vsel %vm559_vm1, %v570_v56, %v572_v2  ;;  %v1483_v8 = vmul.u32.u64.low %v574_v41, %v569_v63  ;;  %v1484_v11 = vmul.u32.u64.high %v574_v41, %v569_v63, %v1483_v8 }
  0x68   :  { %v127_v39 = vsub.s32 32, %v126_v32  ;;  %v128_v9 = vshll.u32 %v119_v60, %v126_v32  ;;  %v131_v10 = vsub.s32 4294967266, %v126_v32  ;;  %v1136_v44 = vmin.u32 %v358_v42, %v356_v37 }
  0x69   :  { %v1489_v12 = vmul.u32.u64.low %v574_v41, %v573_v6  ;;  %v1490_v13 = vmul.u32.u64.high %v574_v41, %v573_v6, %v1489_v12  ;;  %vm57_vm3 = vcmp.lt.s32.totalorder %v1361_v0, 0  ;;  %v581_v19 = vmul.u32 %v574_v41, %v565_v62 }
  0x6a   :  { %v129_v26 = vshrl.u32 %v111_v22, %v127_v39  ;;  %v132_v34 = vadd.s32 127, %v131_v10  ;;  %v360_v52 = vclz %v1136_v44  ;;  %vm56_vm4 = vcmp.le.f32.partialorder %v55_v1, 0.7853982 }
  0x6b   :  { %v584_v22 = vadd.s32 1, %v1484_v11  ;;  %v142_v51 = vsel %vm57_vm3, %v141_v49, %v1442_v53  ;;  %vm583_vm5 = vc.u32 %v1490_v13, %v1483_v8  ;;  %v378_v10 = vsub.s32 4, %v1463_v18 }
  0x6c   :  { %v130_v46 = vor.u32 %v129_v26, %v128_v9  ;;  %v133_v47 = vshll.u32 %v132_v34, 23  ;;  %v1137_v60 = vadd.s32 4294967294, %v360_v52  ;;  %v144_v33 = vsel %vm56_vm4, 0, %v142_v51 }
  0x6d   :  { %v585_v28 = vsel %vm583_vm5, %v584_v22, %v1484_v11  ;;  %v267_v32 = vadd.s32 3, %v144_v33  ;;  %v148_v39 = vand.u32 3, %v144_v33  ;;  %vm294_vm6 = vcmp.lt.s32.totalorder %v1366_v3, 0 }
  0x6e   :  { %v134_v58 = vor.u32 4788187, %v133_v47  ;;  %v137_v59 = vcvt.s32.f32 %v130_v46  ;;  %vm1138_vm2 = vcmp.lt.s32.totalorder %v1137_v60, 0  ;;  %v586_v31 = vadd.s32 %v585_v28, %v581_v19 }
  0x6f   :  { %v363_v15 = vsel %vm1138_vm2, 0, %v1137_v60  ;;  %v268_v42 = vand.u32 3, %v267_v32  ;;  %vm1512_vm7 = vcmp.le.f32.partialorder %v292_v7, 0.7853982  ;;  %vm147_vm8 = vweird.f32 %v1361_v0 }
  0x70   :  { %v135_v5 = vand.u32 2147483647, %v134_v58  ;;  %v364_v16 = vsub.s32 32, %v363_v15  ;;  %v365_v17 = vshll.u32 %v356_v37, %v363_v15  ;;  %v368_v20 = vsub.s32 4294967266, %v363_v15 }
  0x71   :  { %v587_v36 = vadd.s32 536870912, %v586_v31  ;;  %vm149_vm9 = vcmp.lt.s32.totalorder %v148_v39, 2  ;;  %v379_v44 = vsel %vm294_vm6, %v378_v10, %v1463_v18  ;;  %vm150_vm10 = vcmp.eq.s32.totalorder %v148_v39, 0 }
  0x72   :  { %v138_v14 = vmul.f32 %v137_v59, %v135_v5  ;;  %v366_v55 = vshrl.u32 %v348_v23, %v364_v16  ;;  %v369_v25 = vadd.s32 127, %v368_v20  ;;  %vm153_vm11 = vcmp.eq.s32.totalorder %v148_v39, 2 }
  0x73   :  { %v1505_v38 = vshrl.u32 %v587_v36, 30  ;;  %vm273_vm12 = vcmp.eq.s32.totalorder %v268_v42, 2  ;;  %vm270_vm13 = vcmp.eq.s32.totalorder %v268_v42, 0  ;;  %vm269_vm14 = vcmp.lt.s32.totalorder %v268_v42, 2 }
  0x74   :  { %v139_v21 = vxor.u32 2147483648, %v138_v14  ;;  %v367_v1 = vor.u32 %v366_v55, %v365_v17  ;;  %v370_v30 = vshll.u32 %v369_v25, 23  ;;  %v381_v52 = vsel %vm1512_vm7, 0, %v379_v44 }
  0x75   :  { %v589_v40 = vshll.u32 %v1505_v38, 30  ;;  %v501_v56 = vadd.s32 3, %v381_v52  ;;  %v385_v2 = vand.u32 3, %v381_v52  ;;  %v582_v6 = vadd.s32 %v1483_v8, %v1490_v13 }
  0x76   :  { %v140_v27 = vsel %vm57_vm3, %v139_v21, %v138_v14  ;;  %v371_v35 = vor.u32 4788187, %v370_v30  ;;  %v374_v53 = vcvt.s32.f32 %v367_v1  ;;  %vm384_vm5 = vweird.f32 %v1366_v3 }
  0x77   :  { %v143_v29 = vsel %vm56_vm4, %v1361_v0, %v140_v27  ;;  %v590_v34 = vsub.s32 %v586_v31, %v589_v40  ;;  %v502_v5 = vand.u32 3, %v501_v56  ;;  %vm390_vm0 = vcmp.eq.s32.totalorder %v385_v2, 2 }
  0x78   :  { %1178 = vcosq.f32 %v143_v29  ;;  %v372_v37 = vand.u32 2147483647, %v371_v35  ;;  %vm387_vm2 = vcmp.eq.s32.totalorder %v385_v2, 0  ;;  %vm386_vm4 = vcmp.lt.s32.totalorder %v385_v2, 2 }
  0x79   :  { %1180 = vsinq.f32 %v143_v29  ;;  %v592_v45 = vsub.s32 0, %v590_v34  ;;  %vm507_vm1 = vcmp.eq.s32.totalorder %v502_v5, 2  ;;  %vm504_vm3 = vcmp.eq.s32.totalorder %v502_v5, 0 }
  0x7a   :  { %v375_v9 = vmul.f32 %v374_v53, %v372_v37  ;;  %v612_v35 = vsub.s32 4, %v1505_v38 }
  0x7b   :  { %v1144_v48 = vmin.u32 %v592_v45, %v590_v34 }
  0x7c   :  { %v376_v26 = vxor.u32 2147483648, %v375_v9 }
  0x7d   :  { %v594_v57 = vclz %v1144_v48  ;;  %v761_v48 = vlaneseq }
  0x7e   :  { %v377_v41 = vsel %vm294_vm6, %v376_v26, %v375_v9  ;;  %vm503_vm6 = vcmp.lt.s32.totalorder %v502_v5, 2 }
  0x7f   :  { %v380_v7 = vsel %vm1512_vm7, %v1366_v3, %v377_v41  ;;  %v1145_v62 = vadd.s32 4294967294, %v594_v57  ;;  %vm528_vm7 = vcmp.lt.s32.totalorder %v1369_v4, 0  ;;  %v762_v52 = vshrl.u32 %v761_v48, 7 }
  0x80   :  { %1182 = vcosq.f32 %v380_v7  ;;  %v613_v37 = vsel %vm528_vm7, %v612_v35, %v1505_v38 }
  0x81   :  { %1184 = vsinq.f32 %v380_v7  ;;  %vm1146_vm15 = vcmp.lt.s32.totalorder %v1145_v62, 0  ;;  %v1595_v56 = vsub.s32 1, %v762_v52  ;;  %v1597_v57 = vsub.s32 2, %v762_v52 }
  0x82   :  { %v1179_v24 = vpop.eup %1178  ;;  %v597_v23 = vsel %vm1146_vm15, 0, %v1145_v62  ;;  %vm618_vm15 = vweird.f32 %v1369_v4  ;;  %v1609_v2 = vsub.s32 6, %v762_v52  ;;  %v1611_v5 = vsub.s32 7, %v762_v52 }
  0x83   :  { %v1181_v46 = vpop.eup %1180  ;;  %v154_v47 = vxor.u32 2147483648, %v1179_v24  ;;  %v598_v12 = vsub.s32 32, %v597_v23  ;;  %v599_v14 = vshll.u32 %v590_v34, %v597_v23  ;;  %v602_v15 = vsub.s32 4294967266, %v597_v23  ;;  %v1613_v23 = vld [vmem:[#allocation5] sm:$0xff] }
  0x84   :  { %v151_v50 = vxor.u32 2147483648, %v1181_v46 }
  0x85   :  { %v155_v18 = vsel %vm153_vm11, %v154_v47, %v1181_v46  ;;  %v275_v54 = vsel %vm273_vm12, %v154_v47, %v1181_v46  ;;  %v600_v17 = vshrl.u32 %v582_v6, %v598_v12  ;;  %v603_v8 = vadd.s32 127, %v602_v15 }
  0x86   :  { %v152_v58 = vsel %vm150_vm10, %v1179_v24, %v151_v50  ;;  %v272_v59 = vsel %vm270_vm13, %v1179_v24, %v151_v50 }
  0x87   :  { %v156_v49 = vsel %vm149_vm9, %v152_v58, %v155_v18  ;;  %v276_v60 = vsel %vm269_vm14, %v272_v59, %v275_v54  ;;  %v601_v19 = vor.u32 %v600_v17, %v599_v14  ;;  %v604_v21 = vshll.u32 %v603_v8, 23 }
  0x88   :  { %v1527_v63 = vsel %vm147_vm8, nan, %v156_v49  ;;  %v1537_v11 = vsel %vm147_vm8, nan, %v276_v60  ;;  %vm527_vm8 = vcmp.le.f32.partialorder %v526_v61, 0.7853982  ;;  %v1593_v54 = vsub.s32 0, %v762_v52  ;;  %v1605_v60 = vld [vmem:[#allocation7] sm:$0xff] }
  0x89   :  { %162 = vrot.lane.b32.xlu1 %v1527_v63, %s1295_s2  ;;  %159 = vrot.lane.b32.xlu0 %v1527_v63, %s1296_s21  ;;  %v605_v27 = vor.u32 4788187, %v604_v21  ;;  %v608_v28 = vcvt.s32.f32 %v601_v19  ;;  %v615_v3 = vsel %vm527_vm8, 0, %v613_v37  ;;  %v1599_v58 = vsub.s32 3, %v762_v52 }
  0x8a   :  { %v1183_v16 = vpop.eup %1182  ;;  %v735_v61 = vadd.s32 3, %v615_v3  ;;  %v619_v9 = vand.u32 3, %v615_v3  ;;  %v1601_v59 = vsub.s32 4, %v762_v52  ;;  %v1603_v49 = vsub.s32 5, %v762_v52 }
  0x8b   :  { %v1185_v13 = vpop.eup %1184  ;;  %v391_v0 = vxor.u32 2147483648, %v1183_v16  ;;  %v606_v31 = vand.u32 2147483647, %v605_v27  ;;  %v814_v12 = vrot.slane %v1605_v60, %v1593_v54  ;;  %v818_v14 = vrot.slane %v1605_v60, %v1595_v56 }
  0x8c   :  { %v388_v20 = vxor.u32 2147483648, %v1185_v13  ;;  %v736_v10 = vand.u32 3, %v735_v61  ;;  %vm624_vm9 = vcmp.eq.s32.totalorder %v619_v9, 2  ;;  %vm621_vm11 = vcmp.eq.s32.totalorder %v619_v9, 0 }
  0x8d   :  { %282 = vrot.lane.b32.xlu1 %v1537_v11, %s1295_s2  ;;  %279 = vrot.lane.b32.xlu0 %v1537_v11, %s1296_s21  ;;  %v392_v22 = vsel %vm390_vm0, %v391_v0, %v1185_v13  ;;  %v509_v51 = vsel %vm507_vm1, %v391_v0, %v1185_v13  ;;  %v609_v33 = vmul.f32 %v608_v28, %v606_v31  ;;  %vm620_vm13 = vcmp.lt.s32.totalorder %v619_v9, 2  ;;  %v1627_v13 = vld [vmem:[#allocation5 + $0x8] sm:$0xff]  ;;  %v1645_v28 = vld [vmem:[#allocation7 + $0x8] sm:$0xff] }
  0x8e   :  { %v389_v55 = vsel %vm387_vm2, %v1183_v16, %v388_v20  ;;  %v506_v25 = vsel %vm504_vm3, %v1183_v16, %v388_v20  ;;  %vm741_vm10 = vcmp.eq.s32.totalorder %v736_v10, 2  ;;  %vm738_vm12 = vcmp.eq.s32.totalorder %v736_v10, 0 }
  0x8f   :  { %v393_v29 = vsel %vm386_vm4, %v389_v55, %v392_v22  ;;  %v510_v30 = vsel %vm503_vm6, %v506_v25, %v509_v51  ;;  %v610_v36 = vxor.u32 2147483648, %v609_v33  ;;  %vm737_vm14 = vcmp.lt.s32.totalorder %v736_v10, 2 }
  0x90   :  { %v1550_v1 = vsel %vm384_vm5, nan, %v393_v29  ;;  %v1559_v53 = vsel %vm384_vm5, nan, %v510_v30  ;;  %vm168_vm0 = vcmask 261120   ;;  %vm170_vm1 = vcmask 523264  }
  0x91   :  { %285 = vrot.lane.b32.xlu1 %v1537_v11, %s1297_s22  ;;  %165 = vrot.lane.b32.xlu0 %v1527_v63, %s1297_s22  ;;  %v611_v32 = vsel %vm528_vm7, %v610_v36, %v609_v33  ;;  %vm172_vm2 = vcmask 785408   ;;  %v822_v15 = vrot.slane %v1605_v60, %v1597_v57  ;;  %v826_v16 = vrot.slane %v1605_v60, %v1599_v58 }
  0x92   :  { %v614_v39 = vsel %vm527_vm8, %v1369_v4, %v611_v32  ;;  %v830_v17 = vrot.slane %v1605_v60, %v1601_v59  ;;  %v834_v8 = vrot.slane %v1605_v60, %v1603_v49  ;;  %v838_v0 = vrot.slane %v1605_v60, %v1609_v2 }
  0x93   :  { %1186 = vcosq.f32 %v614_v39  ;;  %v842_v20 = vrot.slane %v1605_v60, %v1611_v5  ;;  %v764_v19 = vrot.slane %v1613_v23, %v1593_v54  ;;  %v768_v21 = vrot.slane %v1613_v23, %v1595_v56 }
  0x94   :  { %1188 = vsinq.f32 %v614_v39  ;;  %v772_v22 = vrot.slane %v1613_v23, %v1597_v57  ;;  %v776_v51 = vrot.slane %v1613_v23, %v1599_v58  ;;  %v780_v55 = vrot.slane %v1613_v23, %v1601_v59 }
  0x95   :  { %396 = vrot.lane.b32.xlu0 %v1550_v1, %s1296_s21  ;;  %399 = vrot.lane.b32.xlu1 %v1550_v1, %s1295_s2  ;;  %v784_v25 = vrot.slane %v1613_v23, %v1603_v49  ;;  %v788_v29 = vrot.slane %v1613_v23, %v1609_v2  ;;  %v792_v30 = vrot.slane %v1613_v23, %v1611_v5 }
  0x96   :  { %v873_v31 = vrot.slane %v1627_v13, %v1593_v54  ;;  %v877_v33 = vrot.slane %v1627_v13, %v1595_v56  ;;  %v881_v36 = vrot.slane %v1627_v13, %v1597_v57  ;;  %v885_v32 = vrot.slane %v1627_v13, %v1599_v58 }
  0x97   :  { %v889_v37 = vrot.slane %v1627_v13, %v1601_v59  ;;  %v893_v39 = vrot.slane %v1627_v13, %v1603_v49  ;;  %v897_v3 = vrot.slane %v1627_v13, %v1609_v2  ;;  %v901_v61 = vrot.slane %v1627_v13, %v1611_v5 }
  0x98   :  { %v932_v9 = vrot.slane %v1645_v28, %v1593_v54  ;;  %v936_v10 = vrot.slane %v1645_v28, %v1595_v56 }
  0x99   :  { %402 = vrot.lane.b32.xlu0 %v1550_v1, %s1297_s22  ;;  %513 = vrot.lane.b32.xlu1 %v1559_v53, %s1296_s21 }
  0x9d   :  { %516 = vrot.lane.b32.xlu0 %v1559_v53, %s1295_s2  ;;  %519 = vrot.lane.b32.xlu1 %v1559_v53, %s1297_s22  ;;  %v1187_v40 = vpop.eup %1186 }
  0x9e   :  { %v1189_v42 = vpop.eup %1188  ;;  %v625_v38 = vxor.u32 2147483648, %v1187_v40 }
  0x9f   :  { %v622_v43 = vxor.u32 2147483648, %v1189_v42 }
  0xa0   :  { %v626_v26 = vsel %vm624_vm9, %v625_v38, %v1189_v42  ;;  %v743_v34 = vsel %vm741_vm10, %v625_v38, %v1189_v42  ;;  %v940_v38 = vrot.slane %v1645_v28, %v1597_v57 }
  0xa1   :  { %v623_v41 = vsel %vm621_vm11, %v1187_v40, %v622_v43  ;;  %v740_v44 = vsel %vm738_vm12, %v1187_v40, %v622_v43  ;;  %v1671_v40 = vld [vmem:[#allocation5 + $0x10] sm:$0xff]  ;;  %v944_v43 = vrot.slane %v1645_v28, %v1599_v58 }
  0xa2   :  { %v627_v45 = vsel %vm620_vm13, %v623_v41, %v626_v26  ;;  %v744_v24 = vsel %vm737_vm14, %v740_v44, %v743_v34  ;;  %v948_v26 = vrot.slane %v1645_v28, %v1601_v59 }
  0xa3   :  { %v1575_v7 = vsel %vm618_vm15, nan, %v627_v45  ;;  %v1581_v46 = vsel %vm618_vm15, nan, %v744_v24  ;;  %v1689_v45 = vld [vmem:[#allocation7 + $0x10] sm:$0xff] }
  0xa4   :  { %630 = vrot.lane.b32.xlu0 %v1575_v7, %s1296_s21  ;;  %633 = vrot.lane.b32.xlu1 %v1575_v7, %s1295_s2  ;;  %v1078_v48 = vrot.slane %v1689_v45, %v1611_v5 }
  0xa8   :  { %636 = vrot.lane.b32.xlu0 %v1575_v7, %s1297_s22  ;;  %747 = vrot.lane.b32.xlu1 %v1581_v46, %s1296_s21 }
  0xac   :  { %750 = vrot.lane.b32.xlu0 %v1581_v46, %s1295_s2  ;;  %753 = vrot.lane.b32.xlu1 %v1581_v46, %s1297_s22 }
  0xfb   :  { %v1591_v4 = vpop.permute.xlu1 %162  ;;  %v160_v47 = vpop.permute.xlu0 %159 }
  0xfc   :  { %v169_v34 = vsel %vm168_vm0, %v1527_v63, %v160_v47 }
  0xff   :  { %v280_v50 = vpop.permute.xlu0 %279  ;;  %v283_v18 = vpop.permute.xlu1 %282 }
 0x100   :  { %v288_v42 = vsel %vm168_vm0, %v1537_v11, %v280_v50  ;;  %v1007_v11 = vrot.slane %v1671_v40, %v1601_v59  ;;  %v171_v50 = vsel %vm170_vm1, %v169_v34, %v1591_v4 }
 0x101   :  { %v289_v52 = vsel %vm170_vm1, %v288_v42, %v283_v18 }
 0x103   :  { %v1607_v62 = vpop.permute.xlu0 %165  ;;  %v286_v6 = vpop.permute.xlu1 %285 }
 0x104   :  { %v290_v41 = vsel %vm172_vm2, %v289_v52, %v286_v6  ;;  %v173_v42 = vsel %vm172_vm2, %v171_v50, %v1607_v62 }
 0x105   :  { %v851_v50 = vmul.f32 %v814_v12, %v290_v41  ;;  %v854_v6 = vmul.f32 %v826_v16, %v290_v41  ;;  %v855_v34 = vmul.f32 %v830_v17, %v290_v41  ;;  %v801_v4 = vmul.f32 %v764_v19, %v173_v42 }
 0x106   :  { %v802_v47 = vmul.f32 %v768_v21, %v173_v42  ;;  %v803_v62 = vmul.f32 %v772_v22, %v173_v42  ;;  %v804_v12 = vmul.f32 %v776_v51, %v173_v42  ;;  %v857_v16 = vmul.f32 %v838_v0, %v290_v41 }
 0x107   :  { %v397_v27 = vpop.permute.xlu0 %396  ;;  %v400_v35 = vpop.permute.xlu1 %399  ;;  %v858_v17 = vmul.f32 %v842_v20, %v290_v41  ;;  %v805_v22 = vmul.f32 %v780_v55, %v173_v42  ;;  %v807_v0 = vmul.f32 %v788_v29, %v173_v42  ;;  %v808_v60 = vmul.f32 %v792_v30, %v173_v42 }
 0x108   :  { %v405_v44 = vsel %vm168_vm0, %v1550_v1, %v397_v27  ;;  %v852_v1 = vmul.f32 %v818_v14, %v290_v41  ;;  %v853_v27 = vmul.f32 %v822_v15, %v290_v41  ;;  %v856_v15 = vmul.f32 %v834_v8, %v290_v41 }
 0x109   :  { %v406_v52 = vsel %vm170_vm1, %v405_v44, %v400_v35  ;;  %v806_v8 = vmul.f32 %v784_v25, %v173_v42  ;;  %v862_v41 = vadd.f32 %v854_v6, %v804_v12  ;;  %v863_v44 = vadd.f32 %v855_v34, %v805_v22 }
 0x10a   :  { %v860_v25 = vadd.f32 %v852_v1, %v802_v47  ;;  %v861_v35 = vadd.f32 %v853_v27, %v803_v62  ;;  %v866_v47 = vadd.f32 %v858_v17, %v808_v60 }
 0x10b   :  { %v403_v24 = vpop.permute.xlu0 %402  ;;  %v514_v63 = vpop.permute.xlu1 %513 }
 0x10c   :  { %v407_v14 = vsel %vm172_vm2, %v406_v52, %v403_v24  ;;  %v522_v19 = vsel %vm168_vm0, %v1559_v53, %v514_v63  ;;  %v859_v53 = vadd.f32 %v851_v50, %v801_v4  ;;  %v864_v24 = vadd.f32 %v856_v15, %v806_v8 }
 0x10d   :  { %v910_v20 = vmul.f32 %v873_v31, %v407_v14  ;;  %v911_v55 = vmul.f32 %v877_v33, %v407_v14  ;;  %v912_v29 = vmul.f32 %v881_v36, %v407_v14  ;;  %v913_v23 = vmul.f32 %v885_v32, %v407_v14 }
 0x10e   :  { %v914_v30 = vmul.f32 %v889_v37, %v407_v14  ;;  %v915_v31 = vmul.f32 %v893_v39, %v407_v14  ;;  %v916_v36 = vmul.f32 %v897_v3, %v407_v14  ;;  %v917_v32 = vmul.f32 %v901_v61, %v407_v14 }
 0x10f   :  { %v517_v18 = vpop.permute.xlu0 %516  ;;  %v520_v21 = vpop.permute.xlu1 %519  ;;  %v865_v63 = vadd.f32 %v857_v16, %v807_v0  ;;  %v919_v37 = vadd.f32 %v911_v55, %v860_v25  ;;  %v920_v61 = vadd.f32 %v912_v29, %v861_v35  ;;  %v921_v34 = vadd.f32 %v913_v23, %v862_v41 }
 0x110   :  { %v523_v51 = vsel %vm170_vm1, %v522_v19, %v517_v18  ;;  %v918_v18 = vadd.f32 %v910_v20, %v859_v53  ;;  %v922_v52 = vadd.f32 %v914_v30, %v863_v44  ;;  %v923_v62 = vadd.f32 %v915_v31, %v864_v24 }
 0x111   :  { %v524_v33 = vsel %vm172_vm2, %v523_v51, %v520_v21  ;;  %v924_v50 = vadd.f32 %v916_v36, %v865_v63  ;;  %v925_v1 = vadd.f32 %v917_v32, %v866_v47  ;;  %v1888_v14 = vrot.slane %v1645_v28, %v1611_v5 }
 0x112   :  { %v969_v39 = vmul.f32 %v932_v9, %v524_v33  ;;  %v970_v4 = vmul.f32 %v936_v10, %v524_v33  ;;  %v971_v3 = vmul.f32 %v940_v38, %v524_v33  ;;  %v972_v9 = vmul.f32 %v944_v43, %v524_v33 }
 0x113   :  { %v973_v10 = vmul.f32 %v948_v26, %v524_v33  ;;  %v1886_v38 = vrot.slane %v1645_v28, %v1603_v49  ;;  %v976_v15 = vmul.f32 %v1888_v14, %v524_v33  ;;  %v1889_v8 = vrot.slane %v1671_v40, %v1593_v54 }
 0x114   :  { %v977_v19 = vadd.f32 %v969_v39, %v918_v18  ;;  %v978_v21 = vadd.f32 %v970_v4, %v919_v37  ;;  %v979_v22 = vadd.f32 %v971_v3, %v920_v61  ;;  %v1890_v51 = vrot.slane %v1671_v40, %v1595_v56 }
 0x115   :  { %v974_v27 = vmul.f32 %v1886_v38, %v524_v33  ;;  %v1892_v20 = vrot.slane %v1671_v40, %v1599_v58  ;;  %v1893_v35 = vrot.slane %v1671_v40, %v1603_v49  ;;  %v1894_v29 = vrot.slane %v1671_v40, %v1609_v2 }
 0x116   :  { %v631_v42 = vpop.permute.xlu0 %630  ;;  %v634_v6 = vpop.permute.xlu1 %633  ;;  %v1895_v30 = vrot.slane %v1671_v40, %v1611_v5  ;;  %v981_v44 = vadd.f32 %v973_v10, %v922_v52  ;;  %v984_v47 = vadd.f32 %v976_v15, %v925_v1  ;;  %v1900_v38 = vrot.slane %v1689_v45, %v1601_v59 }
 0x117   :  { %v639_v13 = vsel %vm168_vm0, %v1575_v7, %v631_v42  ;;  %v1887_v7 = vrot.slane %v1645_v28, %v1609_v2  ;;  %v1891_v28 = vrot.slane %v1671_v40, %v1597_v57  ;;  %v982_v24 = vadd.f32 %v974_v27, %v923_v62 }
 0x118   :  { %v640_v16 = vsel %vm170_vm1, %v639_v13, %v634_v6  ;;  %v1897_v62 = vrot.slane %v1689_v45, %v1595_v56  ;;  %v1902_v56 = vrot.slane %v1689_v45, %v1609_v2 }
 0x119   :  { %v975_v12 = vmul.f32 %v1887_v7, %v524_v33  ;;  %v980_v33 = vadd.f32 %v972_v9, %v921_v34  ;;  %v1896_v34 = vrot.slane %v1689_v45, %v1593_v54  ;;  %v1899_v9 = vrot.slane %v1689_v45, %v1599_v58 }
 0x11a   :  { %v637_v17 = vpop.permute.xlu0 %636  ;;  %v748_v43 = vpop.permute.xlu1 %747  ;;  %v1901_v54 = vrot.slane %v1689_v45, %v1603_v49 }
 0x11b   :  { %v641_v26 = vsel %vm172_vm2, %v640_v16, %v637_v17  ;;  %v983_v36 = vadd.f32 %v975_v12, %v924_v50  ;;  %v756_v37 = vsel %vm168_vm0, %v1581_v46, %v748_v43  ;;  %v1898_v46 = vrot.slane %v1689_v45, %v1597_v57 }
 0x11c   :  { %v1028_v0 = vmul.f32 %v1889_v8, %v641_v26  ;;  %v1029_v60 = vmul.f32 %v1890_v51, %v641_v26  ;;  %v1030_v53 = vmul.f32 %v1891_v28, %v641_v26  ;;  %v1031_v55 = vmul.f32 %v1892_v20, %v641_v26 }
 0x11d   :  { %v1032_v25 = vmul.f32 %v1007_v11, %v641_v26  ;;  %v1033_v41 = vmul.f32 %v1893_v35, %v641_v26  ;;  %v1034_v23 = vmul.f32 %v1894_v29, %v641_v26  ;;  %v1035_v31 = vmul.f32 %v1895_v30, %v641_v26 }
 0x11e   :  { %v751_v32 = vpop.permute.xlu0 %750  ;;  %v754_v63 = vpop.permute.xlu1 %753  ;;  %v1036_v11 = vadd.f32 %v1028_v0, %v977_v19  ;;  %v1037_v18 = vadd.f32 %v1029_v60, %v978_v21  ;;  %v1038_v42 = vadd.f32 %v1030_v53, %v979_v22  ;;  %v1039_v6 = vadd.f32 %v1031_v55, %v980_v33 }
 0x11f   :  { %v1040_v39 = vadd.f32 %v1032_v25, %v981_v44  ;;  %v757_v4 = vsel %vm170_vm1, %v756_v37, %v751_v32  ;;  %v1041_v3 = vadd.f32 %v1033_v41, %v982_v24  ;;  %v1042_v40 = vadd.f32 %v1034_v23, %v983_v36 }
 0x120   :  { %v1043_v13 = vadd.f32 %v1035_v31, %v984_v47  ;;  %v758_v61 = vsel %vm172_vm2, %v757_v4, %v754_v63 }
 0x121   :  { %v1087_v52 = vmul.f32 %v1896_v34, %v758_v61  ;;  %v1088_v50 = vmul.f32 %v1897_v62, %v758_v61  ;;  %v1089_v1 = vmul.f32 %v1898_v46, %v758_v61  ;;  %v1090_v10 = vmul.f32 %v1899_v9, %v758_v61 }
 0x122   :  { %v1091_v27 = vmul.f32 %v1900_v38, %v758_v61  ;;  %v1092_v7 = vmul.f32 %v1901_v54, %v758_v61  ;;  %v1093_v12 = vmul.f32 %v1902_v56, %v758_v61  ;;  %v1094_v57 = vmul.f32 %v1078_v48, %v758_v61 }
 0x123   :  { %v1095_v58 = vadd.f32 %v1087_v52, %v1036_v11  ;;  %v1096_v14 = vadd.f32 %v1088_v50, %v1037_v18  ;;  %v1097_v15 = vadd.f32 %v1089_v1, %v1038_v42  ;;  %v1098_v16 = vadd.f32 %v1090_v10, %v1039_v6 }
 0x124   :  { %v1099_v17 = vadd.f32 %v1091_v27, %v1040_v39  ;;  %v1100_v43 = vadd.f32 %v1092_v7, %v1041_v3  ;;  %v1101_v59 = vadd.f32 %v1093_v12, %v1042_v40  ;;  %v1102_v19 = vadd.f32 %v1094_v57, %v1043_v13 }
 0x125   :  { %1103 = vst [vmem:[#allocation8] sm:$0xff] %v1095_v58  ;;  %1104 = vst [vmem:[#allocation8 + $0x8] sm:$0xff] %v1096_v14 }
 0x126   :  { %1105 = vst [vmem:[#allocation8 + $0x10] sm:$0xff] %v1097_v15  ;;  %1106 = vst [vmem:[#allocation8 + $0x18] sm:$0xff] %v1098_v16 }
 0x127   :  { %1107 = vst [vmem:[#allocation8 + $0x20] sm:$0xff] %v1099_v17  ;;  %1108 = vst [vmem:[#allocation8 + $0x28] sm:$0xff] %v1100_v43 }
 0x128   :  { %1109 = vst [vmem:[#allocation8 + $0x30] sm:$0xff] %v1101_v59  ;;  %1110 = vst [vmem:[#allocation8 + $0x38] sm:$0xff] %v1102_v19 }
 0x129   :  { %1267 = shalt.err (!%p1264_p0)
}
 0x12a   :  { %s1268_s28 = scalar_lea.hbm %s1883_s3, 1024 }
 0x12b   :  { %p1269_p1 = scmp.ne.s32.totalorder %s1883_s3, %s1268_s28  ;;  %p1272_p2 = scmp.lt.u32.totalorder %s1268_s28, %s1883_s3 }
 0x12d   :  { %p1274_p3 = pnand %p1272_p2, %p1269_p1 }
 0x12f   :  { %1277 = shalt.err (!%p1274_p3)
}
 0x130   :  { %1120 = dma.vmem_to_hbm [thread:$0]  %s1118_s24, 1024, %s1883_s3, [#allocation4]  }
 0x131   :  { %1282 = dma.done.wait [#allocation4], 1024  }
 0x132   :  { %1283 = vsyncadd [#allocation4], 4294966272 }
 0x133   :  { %1124 = vsyncpa [#allocation3], 1 }
 0x134   :  { %1125 = vsyncpa [#allocation6], 1 }
 0x135   :  { %1126 = vsyncpa [#allocation4], 1 }

</bundles_post_ra>
